<compile_context>
chip_gen: v6e
topology: v6e:2x2x1
jax: 0.10.0
libtpu: 0.0.40
codegen_flags: <defaults>
</compile_context>

<pallas_src>
import functools
import math

import jax
import jax.numpy as jnp
from jax.experimental import pallas as pl
from jax.experimental.pallas import tpu as pltpu


def _bounded_exp_kernel(x_ref, o_ref, *, decay_constant, inv_region,
                        infinite_bound):
    x = x_ref[...]
    xf = x.astype(jnp.float32)          # f32 compute (v5e VPU/EUP have no bf16)
    r = xf * inv_region
    r2 = r * r
    if decay_constant == 0:
        # num == 1 everywhere (even exponent), so exp(1 / (1 + r^2)).
        # approx=False keeps it within the 1e-5 comparison tolerance.
        exp_term = jnp.exp(pl.reciprocal(1.0 + r2, approx=False))
    else:
        num = r2 ** decay_constant      # r^(2d), integer exponent at trace time
        denom = 1.0 + num * r2          # 1 + r^(2d+2)
        exp_term = jnp.exp(num / denom)
    o_ref[...] = ((infinite_bound * xf) * exp_term).astype(o_ref.dtype)


def bounded_exp(x, *, decay_constant=0, non_linearity_region=2,
                infinite_bound=math.exp(-0.5),
                target_block_bytes=2 * 1024 * 1024):
    assert isinstance(decay_constant, int)
    assert 0 < abs(infinite_bound) <= 1
    assert 0 < non_linearity_region
    assert 0 <= decay_constant

    orig_shape = x.shape
    orig_dtype = x.dtype
    n = x.size
    if n == 0:
        return x

    itemsize = jnp.dtype(orig_dtype).itemsize
    sub = max(8, 32 // itemsize)        # sublane packing: 8 f32, 16 bf16, 32 int8
    min_chunk = sub * 128

    x_flat = x.reshape(-1)
    pad = (-n) % min_chunk
    if pad:                             # ragged: pad only the tail
        x_flat = jnp.pad(x_flat, (0, pad))
    total = n + pad                     # fast path: pad == 0 -> no copy at all

    # Widest lane-dense last dim that keeps rows a multiple of the sublane pack.
    width = 128
    for cand in (8192, 4096, 2048, 1024, 512, 256):
        if total % (sub * cand) == 0:
            width = cand
            break
    rows = total // width
    x2d = x_flat.reshape(rows, width)   # contiguous reshape: metadata only

    # ~target_block_bytes per block (1-4 MiB sweet spot), sublane-aligned.
    block_rows = max(sub, (target_block_bytes // (width * itemsize)) // sub * sub)
    block_rows = min(block_rows, rows)
    if rows > sub:
        # keep the grid length >= 2 so both v7x TensorCores get a share.
        half = ((pl.cdiv(rows, 2) + sub - 1) // sub) * sub
        block_rows = min(block_rows, half)
    grid = (pl.cdiv(rows, block_rows),)   # masked last block if not divisible

    kernel = functools.partial(
        _bounded_exp_kernel,
        decay_constant=decay_constant,
        inv_region=1.0 / float(non_linearity_region),
        infinite_bound=float(infinite_bound),
    )

    out2d = pl.pallas_call(
        kernel,
        out_shape=jax.ShapeDtypeStruct((rows, width), orig_dtype),
        grid_spec=pltpu.PrefetchScalarGridSpec(
            num_scalar_prefetch=0,
            grid=grid,
            in_specs=[pl.BlockSpec((block_rows, width), lambda i: (i, 0))],
            out_specs=pl.BlockSpec((block_rows, width), lambda i: (i, 0)),
        ),
        compiler_params=pltpu.CompilerParams(
            dimension_semantics=("parallel",),
            vmem_limit_bytes=32 * 1024 * 1024,
        ),
    )(x2d)

    out_flat = out2d.reshape(-1)
    if pad:
        out_flat = out_flat[:n]         # only on the ragged path
    return out_flat.reshape(orig_shape)


def bounded_exp_ref(x, *, decay_constant=0, non_linearity_region=2,
                    infinite_bound=math.exp(-0.5)):
    ratio = x / non_linearity_region
    denom = 1.0 + jnp.power(ratio, 2 * decay_constant + 2)
    num = jnp.power(ratio, 2 * decay_constant)
    return (infinite_bound * x) * jnp.exp(num / denom)


if __name__ == "__main__":
    key = jax.random.PRNGKey(0)
    # NCHW-style input consistent with the module's typical usage.
    x = jax.random.normal(key, (2, 4, 16, 16), dtype=jnp.float32) * 3.0

    out = jax.block_until_ready(bounded_exp(x))
    ref = bounded_exp_ref(x)
    assert out.shape == x.shape and out.dtype == x.dtype
    assert jnp.allclose(out, ref, atol=1e-5, rtol=1e-5), "mismatch vs reference"

    # Ragged size (exercises the tail-pad path) with nonzero decayConstant.
    x2 = jax.random.normal(jax.random.PRNGKey(1), (3, 5, 7, 11),
                           dtype=jnp.float32)
    out2 = jax.block_until_ready(
        bounded_exp(x2, decay_constant=1, non_linearity_region=1.5))
    ref2 = bounded_exp_ref(x2, decay_constant=1, non_linearity_region=1.5)
    assert out2.shape == x2.shape and out2.dtype == x2.dtype
    assert jnp.allclose(out2, ref2, atol=1e-5, rtol=1e-5), "mismatch (ragged)"

    print("KERNEL_OK")
</pallas_src>

<mosaic_0001>
module attributes {stable_mosaic.version = 11 : i64} {
  func.func @_bounded_exp_kernel(%arg0: i32, %arg1: memref<8x256xf32, #tpu.memory_space<vmem>>, %arg2: memref<8x256xf32, #tpu.memory_space<vmem>>) attributes {dimension_semantics = [#tpu.dimension_semantics<parallel>], iteration_bounds = array<i64: 1>, scalar_prefetch = 0 : i64, scratch_operands = 0 : i64, tpu.core_type = #tpu.core_type<tc>, window_params = [{transform_indices = @transform_0, window_bounds = array<i64: 8, 256>}, {transform_indices = @transform_1, window_bounds = array<i64: 8, 256>}]} {
    %c0 = arith.constant 0 : index
    %c0_0 = arith.constant 0 : index
    %0 = vector.load %arg1[%c0, %c0_0] : memref<8x256xf32, #tpu.memory_space<vmem>>, vector<8x256xf32>
    %cst = arith.constant 5.000000e-01 : f32
    %1 = vector.broadcast %cst : f32 to vector<8x256xf32>
    %2 = arith.mulf %0, %1 : vector<8x256xf32>
    %3 = arith.mulf %2, %2 : vector<8x256xf32>
    %cst_1 = arith.constant 1.000000e+00 : f32
    %4 = vector.broadcast %cst_1 : f32 to vector<8x256xf32>
    %5 = arith.addf %4, %3 : vector<8x256xf32>
    %6 = tpu.reciprocal %5 : vector<8x256xf32> -> vector<8x256xf32>
    %7 = math.exp %6 : vector<8x256xf32>
    %cst_2 = arith.constant 0.606530666 : f32
    %8 = vector.broadcast %cst_2 : f32 to vector<8x256xf32>
    %9 = arith.mulf %8, %0 : vector<8x256xf32>
    %10 = arith.mulf %9, %7 : vector<8x256xf32>
    %c0_3 = arith.constant 0 : index
    %c0_4 = arith.constant 0 : index
    %11 = vector.load %arg2[%c0_3, %c0_4] : memref<8x256xf32, #tpu.memory_space<vmem>>, vector<8x256xf32>
    tpu.vector_store %arg2[%c0_3, %c0_4], %10 {strides = array<i32>} : memref<8x256xf32, #tpu.memory_space<vmem>>, vector<8x256xf32>,
    return
  }
  func.func @transform_0(%arg0: i32) -> (i32, i32) {
    %c0_i32 = arith.constant 0 : i32
    %c0_i32_0 = arith.constant 0 : i32
    return %arg0, %c0_i32 : i32, i32
  }
  func.func @transform_1(%arg0: i32) -> (i32, i32) {
    %c0_i32 = arith.constant 0 : i32
    %c0_i32_0 = arith.constant 0 : i32
    return %arg0, %c0_i32 : i32, i32
  }
}

</mosaic_0001>

<bundles_post_ra>
// kernel: tpu_custom_call.1
= control target key start
LH: loop header
LB: loop body
LE: loop exit
PB: predicated region body
PF: predicated region fallthrough
CT: control target
= control target key end

     0   :  { %6 = vsyncpa [#allocation3], 0  ;;  %s128_s0 = inlined_call_operand.hbm [shape: f32[8,256], index: 0, kind: input, shape index: {}]   ;;  %s129_s1 = inlined_call_operand.hbm [shape: f32[8,256], index: 1, kind: output, shape index: {}]  }
   0x1   :  { %7 = vsyncpa [#allocation4], 0  ;;  %s110_s6 = smov [#allocation2]  }
   0x2   :  { %s14_s7 = sshll.u32 %s110_s6, 4  ;;  %s15_s7 = int_to_ptr.vmem [resolvable:$true] %s14_s7 }
   0x3   :  { %s74_s8 = scalar_lea.vmem %s15_s7, 256  ;;  %p79_p1 = scmp.lt.s32.totalorder %s15_s7, %s15_s7 }
   0x4   :  { %p75_p0 = scmp.ne.s32.totalorder %s15_s7, %s74_s8  ;;  %p80_p2 = scmp.lt.s32.totalorder %s74_s8, %s74_s8 }
   0x6   :  { %p81_p3 = por %p80_p2, %p79_p1 }
   0x8   :  { %p82_p4 = pnand %p81_p3, %p75_p0 }
   0xa   :  { %85 = shalt.err (!%p82_p4)
}
   0xb   :  { %17 = dma.hbm_to_vmem [thread:$0]  %s128_s0, 256, %s15_s7, [#allocation3]  }
   0xc   :  { %106 = dma.done.wait [#allocation3], 256  }
   0xd   :  { %107 = vsyncadd [#allocation3], 4294967040  ;;  %v21_v0 = vld [vmem:[#allocation2] sm:$0xff]  ;;  %v22_v1 = vld [vmem:[#allocation2 + $0x8] sm:$0xff]  ;;  %s111_s0 = smov [#allocation5]  }
   0xe   :  { %v23_v2 = vmul.f32 0.5, %v21_v0  ;;  %v24_v3 = vmul.f32 0.5, %v22_v1  ;;  %v35_v12 = vmul.f32 0.60653067, %v21_v0  ;;  %v36_v13 = vmul.f32 0.60653067, %v22_v1 }
   0xf   :  { %s47_s11 = sshll.u32 %s111_s0, 4  ;;  %s48_s11 = int_to_ptr.vmem [resolvable:$true] %s47_s11 }
  0x10   :  { %v25_v4 = vmul.f32 %v23_v2, %v23_v2  ;;  %v26_v5 = vmul.f32 %v24_v3, %v24_v3  ;;  %s86_s12 = scalar_lea.vmem %s48_s11, 256  ;;  %p91_p6 = scmp.lt.s32.totalorder %s48_s11, %s48_s11 }
  0x11   :  { %p87_p5 = scmp.ne.s32.totalorder %s48_s11, %s86_s12  ;;  %p92_p7 = scmp.lt.s32.totalorder %s86_s12, %s86_s12 }
  0x12   :  { %v27_v6 = vadd.f32 1.0, %v25_v4  ;;  %v28_v7 = vadd.f32 1.0, %v26_v5 }
  0x13   :  { %p93_p8 = por %p92_p7, %p91_p6 }
  0x14   :  { %58 = vrcp.f32 %v27_v6 }
  0x15   :  { %60 = vrcp.f32 %v28_v7  ;;  %p94_p9 = pnand %p93_p8, %p87_p5 }
  0x21   :  { %v59_v8 = vpop.eup %58 }
  0x22   :  { %v61_v9 = vpop.eup %60  ;;  %v31_v10 = vmul.f32 1.442695, %v59_v8 }
  0x23   :  { %v33_v11 = vmul.f32 1.442695, %v61_v9 }
  0x24   :  { %62 = vpow2.f32 %v31_v10 }
  0x25   :  { %64 = vpow2.f32 %v33_v11 }
  0x31   :  { %v63_v14 = vpop.eup %62 }
  0x32   :  { %v65_v15 = vpop.eup %64  ;;  %v37_v16 = vmul.f32 %v63_v14, %v35_v12 }
  0x33   :  { %v38_v17 = vmul.f32 %v65_v15, %v36_v13 }
  0x34   :  { %39 = vst [vmem:[#allocation5] sm:$0xff] %v37_v16 }
  0x35   :  { %40 = vst [vmem:[#allocation5 + $0x8] sm:$0xff] %v38_v17 }
  0x36   :  { %97 = shalt.err (!%p94_p9)
}
  0x37   :  { %50 = dma.vmem_to_hbm [thread:$0]  %s48_s11, 256, %s129_s1, [#allocation4]  }
  0x38   :  { %108 = dma.done.wait [#allocation4], 256  }
  0x39   :  { %109 = vsyncadd [#allocation4], 4294967040 }
  0x3a   :  { %54 = vsyncpa [#allocation3], 1 }
  0x3b   :  { %55 = vsyncpa [#allocation4], 1 }

</bundles_post_ra>
